<compile_context>
chip_gen: v5e
topology: v5e:2x2
jax: 0.10.0
libtpu: 0.0.40
codegen_flags: <defaults>
</compile_context>

<pallas_src>
import jax
import jax.numpy as jnp
from jax.experimental import pallas as pl
from jax.experimental.pallas import tpu as pltpu


def _wce_kernel(logits_ref, target_ref, weight_ref, out_ref):
    # logits_ref: (TB, C)   target_ref: (TB, 1) int32   weight_ref: (TB, 1) f32
    x = logits_ref[...].astype(jnp.float32)
    tgt = target_ref[...]                       # (TB, 1)
    w = weight_ref[...]                         # (TB, 1)

    # Stable row-wise logsumexp.
    m = jnp.max(x, axis=-1, keepdims=True)
    lse = m + jnp.log(jnp.sum(jnp.exp(x - m), axis=-1, keepdims=True))

    # Select logits[i, target[i]] via one-hot compare + row-sum (no gather).
    cls = jax.lax.broadcasted_iota(jnp.int32, x.shape, 1)
    sel = jnp.sum(jnp.where(cls == tgt, x, 0.0), axis=-1, keepdims=True)

    out_ref[...] = (lse - sel) * w


def _sublane_multiple(dtype):
    # min second-to-last-dim tile per element width (f32:8, bf16:16, int8:32)
    return {1: 32, 2: 16, 4: 8}.get(jnp.dtype(dtype).itemsize, 8)


def _choose_row_tile(batch, num_classes, dtype, target_bytes=2 << 20):
    sub = max(_sublane_multiple(dtype), 8)
    itemsize = jnp.dtype(dtype).itemsize
    # ~2 MiB of logits per block, rounded down to the sublane multiple.
    cap = max(sub, (target_bytes // max(1, num_classes * itemsize)) // sub * sub)
    if batch <= cap:
        # Whole batch in a single block; full-extent dims need no alignment.
        return batch
    return cap


def weight_ce_loss(logits, target, weights=None, aggregate="mean",
                   block_rows=None):
    """JAX/Pallas equivalent of WeightCELoss.forward."""
    assert aggregate in ("sum", "mean", None)
    assert logits.ndim == 2, "logits must be 2-D [batch, num_classes]"

    if target.ndim == 2:
        target = target.reshape(target.shape[0],)
    assert target.ndim == 1
    b, c = logits.shape
    assert target.shape[0] == b

    if weights is None:
        w = jnp.ones((b,), dtype=jnp.float32)
    else:
        assert weights.shape == (b,)
        w = weights.astype(jnp.float32)

    tgt = target.astype(jnp.int32).reshape(b, 1)
    w2 = w.reshape(b, 1)

    tb = block_rows if block_rows is not None else _choose_row_tile(
        b, c, logits.dtype)
    grid = (pl.cdiv(b, tb),)

    losses = pl.pallas_call(
        _wce_kernel,
        out_shape=jax.ShapeDtypeStruct((b, 1), jnp.float32),
        grid_spec=pltpu.PrefetchScalarGridSpec(
            num_scalar_prefetch=0,
            grid=grid,
            in_specs=[
                pl.BlockSpec((tb, c), lambda i: (i, 0)),
                pl.BlockSpec((tb, 1), lambda i: (i, 0)),
                pl.BlockSpec((tb, 1), lambda i: (i, 0)),
            ],
            out_specs=pl.BlockSpec((tb, 1), lambda i: (i, 0)),
        ),
        compiler_params=pltpu.CompilerParams(
            # rows independent -> megacore sharding on v7x
            dimension_semantics=("parallel",),
            # headroom for double-buffered 2 MiB blocks + f32 temps on all chips
            vmem_limit_bytes=32 << 20,
        ),
    )(logits, tgt, w2)

    loss = losses[:, 0]
    if aggregate == "sum":
        return jnp.sum(loss)
    elif aggregate == "mean":
        return jnp.mean(loss)
    return loss


def _reference_wce(logits, target, weights=None, aggregate="mean"):
    x = logits.astype(jnp.float32)
    lse = jax.scipy.special.logsumexp(x, axis=1)
    sel = jnp.take_along_axis(
        x, target.astype(jnp.int32).reshape(-1, 1), axis=1)[:, 0]
    loss = lse - sel
    if weights is not None:
        loss = loss * weights.astype(jnp.float32)
    if aggregate == "sum":
        return jnp.sum(loss)
    elif aggregate == "mean":
        return jnp.mean(loss)
    return loss


if __name__ == "__main__":
    key = jax.random.PRNGKey(0)
    k1, k2, k3 = jax.random.split(key, 3)

    # Small shapes consistent with the module: batch=16 samples, 32 classes.
    B, C = 16, 32
    logits = jax.random.normal(k1, (B, C), dtype=jnp.float32)
    target = jax.random.randint(k2, (B,), 0, C, dtype=jnp.int32)
    weights = jax.random.uniform(k3, (B,), dtype=jnp.float32)

    # aggregate='mean' with weights (default WeightCELoss path)
    out = jax.block_until_ready(weight_ce_loss(logits, target, weights, "mean"))
    ref = _reference_wce(logits, target, weights, "mean")
    assert jnp.allclose(out, ref, rtol=1e-5, atol=1e-5), (out, ref)

    # ragged batch, no weights, per-sample output (aggregate=None) and 'sum'
    B2 = 10
    logits2 = jax.random.normal(k1, (B2, C), dtype=jnp.float32)
    target2 = jax.random.randint(k2, (B2,), 0, C, dtype=jnp.int32)
    out2 = jax.block_until_ready(weight_ce_loss(logits2, target2, None, None))
    ref2 = _reference_wce(logits2, target2, None, None)
    assert jnp.allclose(out2, ref2, rtol=1e-5, atol=1e-5), (out2, ref2)

    out3 = jax.block_until_ready(weight_ce_loss(logits2, target2, None, "sum"))
    ref3 = _reference_wce(logits2, target2, None, "sum")
    assert jnp.allclose(out3, ref3, rtol=1e-5, atol=1e-5), (out3, ref3)

    # multi-block ragged batch (exercises the partial final block, no padding)
    B3, C3 = 300, 256
    logits3 = jax.random.normal(k1, (B3, C3), dtype=jnp.float32)
    target3 = jax.random.randint(k2, (B3,), 0, C3, dtype=jnp.int32)
    weights3 = jax.random.uniform(k3, (B3,), dtype=jnp.float32)
    out4 = jax.block_until_ready(
        weight_ce_loss(logits3, target3, weights3, "mean", block_rows=128))
    ref4 = _reference_wce(logits3, target3, weights3, "mean")
    assert jnp.allclose(out4, ref4, rtol=1e-5, atol=1e-5), (out4, ref4)

    print("KERNEL_OK")
</pallas_src>

<mosaic_0001>
module attributes {stable_mosaic.version = 11 : i64} {
  func.func @_wce_kernel(%arg0: i32, %arg1: memref<16x32xf32, #tpu.memory_space<vmem>>, %arg2: memref<16x1xi32, #tpu.memory_space<vmem>>, %arg3: memref<16x1xf32, #tpu.memory_space<vmem>>, %arg4: memref<16x1xf32, #tpu.memory_space<vmem>>) attributes {dimension_semantics = [#tpu.dimension_semantics<parallel>], iteration_bounds = array<i64: 1>, scalar_prefetch = 0 : i64, scratch_operands = 0 : i64, tpu.core_type = #tpu.core_type<tc>, window_params = [{transform_indices = @transform_0, window_bounds = array<i64: 16, 32>}, {transform_indices = @transform_1, window_bounds = array<i64: 16, 1>}, {transform_indices = @transform_2, window_bounds = array<i64: 16, 1>}, {transform_indices = @transform_3, window_bounds = array<i64: 16, 1>}]} {
    %c0 = arith.constant 0 : index
    %c0_0 = arith.constant 0 : index
    %0 = vector.load %arg1[%c0, %c0_0] : memref<16x32xf32, #tpu.memory_space<vmem>>, vector<16x32xf32>
    %c0_1 = arith.constant 0 : index
    %c0_2 = arith.constant 0 : index
    %1 = vector.load %arg2[%c0_1, %c0_2] : memref<16x1xi32, #tpu.memory_space<vmem>>, vector<16x1xi32>
    %c0_3 = arith.constant 0 : index
    %c0_4 = arith.constant 0 : index
    %2 = vector.load %arg3[%c0_3, %c0_4] : memref<16x1xf32, #tpu.memory_space<vmem>>, vector<16x1xf32>
    %cst = arith.constant dense<0xFF800000> : vector<16xf32>
    %3 = vector.multi_reduction <maximumf>, %0, %cst [1] : vector<16x32xf32> to vector<16xf32>
    %4 = vector.shape_cast %3 : vector<16xf32> to vector<16x1xf32>
    %5 = vector.broadcast %4 : vector<16x1xf32> to vector<16x32xf32>
    %6 = arith.subf %0, %5 : vector<16x32xf32>
    %7 = math.exp %6 : vector<16x32xf32>
    %cst_5 = arith.constant dense<0.000000e+00> : vector<16xf32>
    %8 = vector.multi_reduction <add>, %7, %cst_5 [1] : vector<16x32xf32> to vector<16xf32>
    %9 = vector.shape_cast %8 : vector<16xf32> to vector<16x1xf32>
    %10 = math.log %9 : vector<16x1xf32>
    %11 = arith.addf %4, %10 : vector<16x1xf32>
    %12 = tpu.iota {dimensions = array<i32: 1>} : vector<16x32xi32>
    %13 = vector.broadcast %1 : vector<16x1xi32> to vector<16x32xi32>
    %14 = arith.cmpi eq, %12, %13 : vector<16x32xi32>
    %cst_6 = arith.constant 0.000000e+00 : f32
    %15 = vector.broadcast %cst_6 : f32 to vector<16x32xf32>
    %16 = arith.select %14, %0, %15 : vector<16x32xi1>, vector<16x32xf32>
    %cst_7 = arith.constant dense<0.000000e+00> : vector<16xf32>
    %17 = vector.multi_reduction <add>, %16, %cst_7 [1] : vector<16x32xf32> to vector<16xf32>
    %18 = vector.shape_cast %17 : vector<16xf32> to vector<16x1xf32>
    %19 = arith.subf %11, %18 : vector<16x1xf32>
    %20 = arith.mulf %19, %2 : vector<16x1xf32>
    %c0_8 = arith.constant 0 : index
    %c0_9 = arith.constant 0 : index
    %21 = vector.load %arg4[%c0_8, %c0_9] : memref<16x1xf32, #tpu.memory_space<vmem>>, vector<16x1xf32>
    tpu.vector_store %arg4[%c0_8, %c0_9], %20 {strides = array<i32>} : memref<16x1xf32, #tpu.memory_space<vmem>>, vector<16x1xf32>,
    return
  }
  func.func @transform_0(%arg0: i32) -> (i32, i32) {
    %c0_i32 = arith.constant 0 : i32
    %c0_i32_0 = arith.constant 0 : i32
    return %arg0, %c0_i32 : i32, i32
  }
  func.func @transform_1(%arg0: i32) -> (i32, i32) {
    %c0_i32 = arith.constant 0 : i32
    %c0_i32_0 = arith.constant 0 : i32
    return %arg0, %c0_i32 : i32, i32
  }
  func.func @transform_2(%arg0: i32) -> (i32, i32) {
    %c0_i32 = arith.constant 0 : i32
    %c0_i32_0 = arith.constant 0 : i32
    return %arg0, %c0_i32 : i32, i32
  }
  func.func @transform_3(%arg0: i32) -> (i32, i32) {
    %c0_i32 = arith.constant 0 : i32
    %c0_i32_0 = arith.constant 0 : i32
    return %arg0, %c0_i32 : i32, i32
  }
}

</mosaic_0001>

<bundles_post_ra>
// kernel: tpu_custom_call.1
= control target key start
LH: loop header
LB: loop body
LE: loop exit
PB: predicated region body
PF: predicated region fallthrough
CT: control target
= control target key end

     0   :  { %vm20_vm0 = vcmask 261120   ;;  %v85_v1 = vmov 0   ;;  %v45_v7 = vlaneseq  ;;  %vm67_vm3 = vcmask 7168   ;;  %s136_s0 = inlined_call_operand.vmem [shape: f32[16,32], index: 0, kind: input, shape index: {}]   ;;  %s137_s1 = inlined_call_operand.vmem [shape: s32[16,1], index: 1, kind: input, shape index: {}]   ;;  %s138_s2 = inlined_call_operand.vmem [shape: f32[16,1], index: 2, kind: input, shape index: {}]   ;;  %s139_s3 = inlined_call_operand.vmem [shape: f32[16,1], index: 3, kind: output, shape index: {}]  }
   0x1   :  { %v14_v0 = vld [vmem:[%s136_s0] sm:$0xff]  ;;  %75 = vset.pattern.permute.xlu1 %v85_v1  ;;  %76 = vset.pattern.permute.xlu0 %v85_v1  ;;  %v15_v4 = vld [vmem:[%s136_s0 + $0x8] sm:$0xff] }
   0x2   :  { %v16_v2 = vld [vmem:[%s137_s1] sm:$0xff]  ;;  %v21_v3 = vsel %vm20_vm0, %v14_v0, -inf  ;;  %v17_v5 = vld [vmem:[%s137_s1 + $0x8] sm:$0xff]  ;;  %v24_v6 = vsel %vm20_vm0, %v15_v4, -inf  ;;  %v46_v8 = vand.u32 127, %v45_v7 }
   0x3   :  { %48 = vperm.xlu1 %75, %v16_v2   ;;  %22 = vmax.xlane.f32.xlu0 %v21_v3  ;;  %v18_v31 = vld [vmem:[%s138_s2] sm:$0xff]  ;;  %v19_v37 = vld [vmem:[%s138_s2 + $0x8] sm:$0xff] }
   0xb   :  { %51 = vperm.xlu1 %75, %v17_v5   ;;  %25 = vmax.xlane.f32.xlu0 %v24_v6 }
  0x75   :  { %v49_v9 = vpop.permute.xlu1 %48 }
  0x76   :  { %vm53_vm1 = vcmp.eq.s32.totalorder %v46_v8, %v49_v9  ;;  %v23_v10 = vpop.xlane.xlu0 %22 }
  0x77   :  { %v55_v11 = vsel %vm53_vm1, %v14_v0, 0.0  ;;  %v27_v12 = vsub.f32 %v14_v0, %v23_v10 }
  0x78   :  { %v57_v13 = vsel %vm20_vm0, %v55_v11, 0.0 }
  0x79   :  { %58 = vadd.xlane.f32.xlu0 %v57_v13  ;;  %v29_v14 = vmul.f32 1.442695, %v27_v12 }
  0x7b   :  { %77 = vpow2.f32 %v29_v14 }
  0x7d   :  { %v52_v15 = vpop.permute.xlu1 %51 }
  0x7e   :  { %vm54_vm2 = vcmp.eq.s32.totalorder %v46_v8, %v52_v15  ;;  %v26_v16 = vpop.xlane.xlu0 %25 }
  0x7f   :  { %v56_v17 = vsel %vm54_vm2, %v15_v4, 0.0  ;;  %v28_v18 = vsub.f32 %v15_v4, %v26_v16 }
  0x80   :  { %v60_v19 = vsel %vm20_vm0, %v56_v17, 0.0 }
  0x81   :  { %61 = vadd.xlane.f32.xlu1 %v60_v19  ;;  %v78_v20 = vpop.eup %77  ;;  %v31_v21 = vmul.f32 1.442695, %v28_v18 }
  0x82   :  { %v33_v22 = vsel %vm20_vm0, %v78_v20, 0.0 }
  0x83   :  { %79 = vpow2.f32 %v31_v21  ;;  %34 = vadd.xlane.f32.xlu2 %v33_v22 }
  0x89   :  { %v80_v23 = vpop.eup %79 }
  0x8a   :  { %v36_v24 = vsel %vm20_vm0, %v80_v23, 0.0 }
  0x8b   :  { %37 = vadd.xlane.f32.xlu2 %v36_v24 }
  0xec   :  { %v59_v29 = vpop.xlane.xlu0 %58 }
  0xf4   :  { %v62_v38 = vpop.xlane.xlu1 %61 }
  0xf6   :  { %v35_v25 = vpop.xlane.xlu2 %34 }
  0xf7   :  { %81 = vlog2.f32 %v35_v25 }
  0xfd   :  { %v82_v26 = vpop.eup %81 }
  0xfe   :  { %v40_v27 = vmul.f32 0.6931472, %v82_v26  ;;  %v38_v28 = vpop.xlane.xlu2 %37 }
  0xff   :  { %83 = vlog2.f32 %v38_v28 }
 0x100   :  { %v43_v30 = vadd.f32 %v40_v27, %v23_v10 }
 0x102   :  { %v63_v32 = vsub.f32 %v43_v30, %v59_v29 }
 0x104   :  { %v65_v33 = vmul.f32 %v63_v32, %v18_v31 }
 0x105   :  { %v84_v34 = vpop.eup %83 }
 0x106   :  { %v42_v35 = vmul.f32 0.6931472, %v84_v34  ;;  %68 = vst.msk [vmem:[%s139_s3] sm:$0xff] %vm67_vm3, %v65_v33 }
 0x108   :  { %v44_v36 = vadd.f32 %v42_v35, %v26_v16 }
 0x10a   :  { %v64_v39 = vsub.f32 %v44_v36, %v62_v38 }
 0x10c   :  { %v66_v40 = vmul.f32 %v64_v39, %v19_v37 }
 0x10e   :  { %69 = vst.msk [vmem:[%s139_s3 + $0x8] sm:$0xff] %vm67_vm3, %v66_v40 }

</bundles_post_ra>
